<compile_context>
chip_gen: v5e
topology: v5e:2x2
jax: 0.10.0
libtpu: 0.0.40
codegen_flags: <defaults>
</compile_context>

<pallas_src>
import jax
import jax.numpy as jnp
import numpy as np
from jax.experimental import pallas as pl
from jax.experimental.pallas import tpu as pltpu


def _layernorm(x, gamma, beta, eps=1e-5):
    """Single-pass LayerNorm over the last axis (one reduction sweep)."""
    x = x.astype(jnp.float32)
    mu = jnp.mean(x, axis=-1, keepdims=True)
    m2 = jnp.mean(x * x, axis=-1, keepdims=True)
    var = m2 - mu * mu
    return (x - mu) * jax.lax.rsqrt(var + eps) * gamma + beta


def _gelu_exact(x):
    # nn.GELU() default in PyTorch is the exact erf-based GELU.
    return 0.5 * x * (1.0 + jax.lax.erf(x * np.float32(1.0 / np.sqrt(2.0))))


def mixer_block_kernel(x_ref, gamma_ref, beta_ref,
                       w1aT_ref, b1a_ref, w1bT_ref, b1b_ref,
                       w2a_ref, b2a_ref, w2b_ref, b2b_ref,
                       out_ref):
    bt, P, D = x_ref.shape
    gamma = gamma_ref[...]              # (1, D)  f32
    beta = beta_ref[...]                # (1, D)  f32
    w1aT = w1aT_ref[...]                # (4P, P) bf16 (pre-transposed on host)
    w1bT = w1bT_ref[...]                # (P, 4P) bf16 (pre-transposed on host)
    b1a = b1a_ref[...]                  # (4P, 1) f32
    b1b = b1b_ref[...]                  # (P, 1)  f32

    # ---- token-mixing MLP: contract over P, D stays on the lane axis --------
    # Small static batch tile -> unrolled loop of 2-D matmuls, no .T in-kernel.
    u_rows = []
    for b in range(bt):
        xb = x_ref[b]                                                      # (P, D) f32
        xn = _layernorm(xb, gamma, beta).astype(jnp.bfloat16)
        h = jnp.dot(w1aT, xn, preferred_element_type=jnp.float32) + b1a   # (4P, D) f32
        h = _gelu_exact(h).astype(jnp.bfloat16)
        t = jnp.dot(w1bT, h, preferred_element_type=jnp.float32) + b1b    # (P, D)  f32
        u_rows.append(t + xb)                                             # residual (f32)
    u = jnp.concatenate(u_rows, axis=0) if bt > 1 else u_rows[0]          # (bt*P, D)

    # ---- channel-mixing MLP on the flattened (bt*P, D) slab -----------------
    un = _layernorm(u, gamma, beta).astype(jnp.bfloat16)
    g = jnp.dot(un, w2a_ref[...], preferred_element_type=jnp.float32) + b2a_ref[...]
    g = _gelu_exact(g).astype(jnp.bfloat16)                               # (bt*P, 4D)
    g = jnp.dot(g, w2b_ref[...], preferred_element_type=jnp.float32) + b2b_ref[...]
    out = g + u                                                           # (bt*P, D) f32

    out_ref[...] = out.reshape(bt, P, D).astype(out_ref.dtype)


def _pick_batch_tile(B, max_bt=8):
    """Largest batch tile <= max_bt that divides B; prefer >= 2 grid steps so
    the pipeline / megacore have work to overlap."""
    divisors = [d for d in range(1, min(B, max_bt) + 1) if B % d == 0]
    multi_step = [d for d in divisors if B // d >= 2]
    return max(multi_step) if multi_step else max(divisors)


def mixer_block(x, params, max_batch_tile=8):
    """x: (B, P, D) float32.  params: canonical (in, out) weights, 1-D biases."""
    B, P, D = x.shape
    bt = _pick_batch_tile(B, max_batch_tile)
    bf16, f32 = jnp.bfloat16, jnp.float32

    # Host-side layout prep: pre-transpose token-mix weights (contract over P),
    # cast matmul operands to bf16, shape biases for lane-broadcast.
    ops = (
        params["gamma"].reshape(1, D).astype(f32),
        params["beta"].reshape(1, D).astype(f32),
        params["w1a"].T.astype(bf16),               # (4P, P)
        params["b1a"].reshape(-1, 1).astype(f32),   # (4P, 1)
        params["w1b"].T.astype(bf16),               # (P, 4P)
        params["b1b"].reshape(-1, 1).astype(f32),   # (P, 1)
        params["w2a"].astype(bf16),                 # (D, 4D)
        params["b2a"].reshape(1, -1).astype(f32),   # (1, 4D)
        params["w2b"].astype(bf16),                 # (4D, D)
        params["b2b"].reshape(1, -1).astype(f32),   # (1, D)
    )

    def full_spec(a):
        # Resident parameter: whole array as one block with a constant block
        # index -> fetched once, not re-DMA'd per grid step.
        return pl.BlockSpec(a.shape, lambda i, _nd=a.ndim: (0,) * _nd)

    in_specs = [pl.BlockSpec((bt, P, D), lambda i: (i, 0, 0))]
    in_specs += [full_spec(a) for a in ops]

    # Advisory cost estimate (4 matmuls, erf + rsqrt transcendentals, IO bytes).
    H1, H2 = 4 * P, 4 * D
    flops = 2 * B * (H1 * P * D + P * H1 * D + P * D * H2 + P * H2 * D)
    transcendentals = B * (H1 * D + P * H2) + 2 * B * P
    bytes_accessed = (2 * B * P * D * 4                              # x in + out (f32)
                      + 2 * (H1 * P + P * H1 + D * H2 + H2 * D)      # bf16 weights
                      + 4 * (H1 + P + H2 + D + 2 * D))               # f32 biases + gamma/beta

    return pl.pallas_call(
        mixer_block_kernel,
        out_shape=jax.ShapeDtypeStruct((B, P, D), x.dtype),
        grid_spec=pltpu.PrefetchScalarGridSpec(
            num_scalar_prefetch=0,
            grid=(B // bt,),
            in_specs=in_specs,
            out_specs=pl.BlockSpec((bt, P, D), lambda i: (i, 0, 0)),
        ),
        compiler_params=pltpu.CompilerParams(
            dimension_semantics=("parallel",),
            # Raise the scoped VMEM limit (defaults: 16/32/32 MiB on v5e/v6e/v7x)
            # while leaving headroom under v7x's 64 MiB physical VMEM.
            vmem_limit_bytes=48 * 1024 * 1024,
        ),
        cost_estimate=pl.CostEstimate(
            flops=flops,
            transcendentals=transcendentals,
            bytes_accessed=bytes_accessed),
    )(x, *ops)


def make_params(key, num_patchs, dim, factor=4):
    """Deterministic synthetic parameters.  Linear weights are stored as
    (in, out) (i.e. PyTorch W^T); biases are 1-D."""
    ks = jax.random.split(key, 8)
    s = 0.05
    f32 = jnp.float32
    return dict(
        gamma=jnp.ones((1, dim), f32),
        beta=jnp.zeros((1, dim), f32),
        # mlp1: Linear(P -> 4P), Linear(4P -> P)   (acts on the patch axis)
        w1a=s * jax.random.normal(ks[0], (num_patchs, factor * num_patchs), f32),
        b1a=s * jax.random.normal(ks[1], (factor * num_patchs,), f32),
        w1b=s * jax.random.normal(ks[2], (factor * num_patchs, num_patchs), f32),
        b1b=s * jax.random.normal(ks[3], (num_patchs,), f32),
        # mlp2: Linear(D -> 4D), Linear(4D -> D)   (acts on the feature axis)
        w2a=s * jax.random.normal(ks[4], (dim, factor * dim), f32),
        b2a=s * jax.random.normal(ks[5], (factor * dim,), f32),
        w2b=s * jax.random.normal(ks[6], (factor * dim, dim), f32),
        b2b=s * jax.random.normal(ks[7], (dim,), f32),
    )


def mixer_block_ref(x, p, matmul_dtype=jnp.float32):
    """Plain-JAX reference mirroring the PyTorch forward.  With
    matmul_dtype=bf16 it also mirrors the kernel's matmul-operand precision."""
    cast = lambda a: a.astype(matmul_dtype)

    def mm(a, b):
        return jnp.matmul(cast(a), cast(b), preferred_element_type=jnp.float32)

    def ln(v):
        return _layernorm(v, p["gamma"], p["beta"])

    x1 = ln(x)                                       # (B, P, D)
    y = jnp.swapaxes(x1, 1, 2)                       # (B, D, P)
    y = _gelu_exact(mm(y, p["w1a"]) + p["b1a"])      # (B, D, 4P)
    y = mm(y, p["w1b"]) + p["b1b"]                   # (B, D, P)
    x1 = jnp.swapaxes(y, 1, 2) + x                   # (B, P, D)
    h = _gelu_exact(mm(ln(x1), p["w2a"]) + p["b2a"])  # (B, P, 4D)
    return mm(h, p["w2b"]) + p["b2b"] + x1            # (B, P, D)


if __name__ == "__main__":
    B, P, D = 2, 8, 32     # batch=2, num_patchs=8, dim=32, expension_factor=4
    key = jax.random.PRNGKey(0)
    kx, kp = jax.random.split(key)
    x = jax.random.normal(kx, (B, P, D), jnp.float32)
    params = make_params(kp, P, D, factor=4)

    out = jax.block_until_ready(mixer_block(x, params))

    # 1) precision-matched reference (bf16 matmul operands, f32 accumulation)
    ref_matched = jax.block_until_ready(mixer_block_ref(x, params, jnp.bfloat16))
    np.testing.assert_allclose(np.asarray(out), np.asarray(ref_matched),
                               rtol=5e-3, atol=5e-3)

    # 2) exact f32 PyTorch-equivalent reference (loose tol covers bf16 operand rounding)
    ref_exact = jax.block_until_ready(mixer_block_ref(x, params, jnp.float32))
    np.testing.assert_allclose(np.asarray(out), np.asarray(ref_exact),
                               rtol=5e-2, atol=5e-2)

    print("KERNEL_OK")
</pallas_src>

<mosaic_0001>
module attributes {stable_mosaic.version = 11 : i64} {
  func.func @mixer_block_kernel(%arg0: i32, %arg1: memref<1x8x32xf32, #tpu.memory_space<vmem>>, %arg2: memref<1x32xf32, #tpu.memory_space<vmem>>, %arg3: memref<1x32xf32, #tpu.memory_space<vmem>>, %arg4: memref<32x8xbf16, #tpu.memory_space<vmem>>, %arg5: memref<32x1xf32, #tpu.memory_space<vmem>>, %arg6: memref<8x32xbf16, #tpu.memory_space<vmem>>, %arg7: memref<8x1xf32, #tpu.memory_space<vmem>>, %arg8: memref<32x128xbf16, #tpu.memory_space<vmem>>, %arg9: memref<1x128xf32, #tpu.memory_space<vmem>>, %arg10: memref<128x32xbf16, #tpu.memory_space<vmem>>, %arg11: memref<1x32xf32, #tpu.memory_space<vmem>>, %arg12: memref<1x8x32xf32, #tpu.memory_space<vmem>>) attributes {dimension_semantics = [#tpu.dimension_semantics<parallel>], iteration_bounds = array<i64: 2>, scalar_prefetch = 0 : i64, scratch_operands = 0 : i64, tpu.core_type = #tpu.core_type<tc>, window_params = [{transform_indices = @transform_0, window_bounds = array<i64: 1, 8, 32>}, {pipeline_mode = #tpu.pipeline_mode<synchronous>, transform_indices = @transform_1, window_bounds = array<i64: 1, 32>}, {pipeline_mode = #tpu.pipeline_mode<synchronous>, transform_indices = @transform_2, window_bounds = array<i64: 1, 32>}, {pipeline_mode = #tpu.pipeline_mode<synchronous>, transform_indices = @transform_3, window_bounds = array<i64: 32, 8>}, {pipeline_mode = #tpu.pipeline_mode<synchronous>, transform_indices = @transform_4, window_bounds = array<i64: 32, 1>}, {pipeline_mode = #tpu.pipeline_mode<synchronous>, transform_indices = @transform_5, window_bounds = array<i64: 8, 32>}, {pipeline_mode = #tpu.pipeline_mode<synchronous>, transform_indices = @transform_6, window_bounds = array<i64: 8, 1>}, {pipeline_mode = #tpu.pipeline_mode<synchronous>, transform_indices = @transform_7, window_bounds = array<i64: 32, 128>}, {pipeline_mode = #tpu.pipeline_mode<synchronous>, transform_indices = @transform_8, window_bounds = array<i64: 1, 128>}, {pipeline_mode = #tpu.pipeline_mode<synchronous>, transform_indices = @transform_9, window_bounds = array<i64: 128, 32>}, {pipeline_mode = #tpu.pipeline_mode<synchronous>, transform_indices = @transform_10, window_bounds = array<i64: 1, 32>}, {transform_indices = @transform_11, window_bounds = array<i64: 1, 8, 32>}]} {
    %c0 = arith.constant 0 : index
    %c0_0 = arith.constant 0 : index
    %0 = vector.load %arg2[%c0, %c0_0] : memref<1x32xf32, #tpu.memory_space<vmem>>, vector<1x32xf32>
    %c0_1 = arith.constant 0 : index
    %c0_2 = arith.constant 0 : index
    %1 = vector.load %arg3[%c0_1, %c0_2] : memref<1x32xf32, #tpu.memory_space<vmem>>, vector<1x32xf32>
    %c0_3 = arith.constant 0 : index
    %c0_4 = arith.constant 0 : index
    %2 = vector.load %arg4[%c0_3, %c0_4] : memref<32x8xbf16, #tpu.memory_space<vmem>>, vector<32x8xbf16>
    %c0_5 = arith.constant 0 : index
    %c0_6 = arith.constant 0 : index
    %3 = vector.load %arg6[%c0_5, %c0_6] : memref<8x32xbf16, #tpu.memory_space<vmem>>, vector<8x32xbf16>
    %c0_7 = arith.constant 0 : index
    %c0_8 = arith.constant 0 : index
    %4 = vector.load %arg5[%c0_7, %c0_8] : memref<32x1xf32, #tpu.memory_space<vmem>>, vector<32x1xf32>
    %c0_9 = arith.constant 0 : index
    %c0_10 = arith.constant 0 : index
    %5 = vector.load %arg7[%c0_9, %c0_10] : memref<8x1xf32, #tpu.memory_space<vmem>>, vector<8x1xf32>
    %c0_11 = arith.constant 0 : index
    %c0_12 = arith.constant 0 : index
    %c0_13 = arith.constant 0 : index
    %6 = vector.load %arg1[%c0_11, %c0_12, %c0_13] : memref<1x8x32xf32, #tpu.memory_space<vmem>>, vector<1x8x32xf32>
    %7 = vector.shape_cast %6 : vector<1x8x32xf32> to vector<8x32xf32>
    %cst = arith.constant dense<0.000000e+00> : vector<8xf32>
    %8 = vector.multi_reduction <add>, %7, %cst [1] : vector<8x32xf32> to vector<8xf32>
    %9 = vector.shape_cast %8 : vector<8xf32> to vector<8x1xf32>
    %cst_14 = arith.constant 3.200000e+01 : f32
    %10 = vector.broadcast %cst_14 : f32 to vector<8x1xf32>
    %11 = arith.divf %9, %10 : vector<8x1xf32>
    %12 = arith.mulf %7, %7 : vector<8x32xf32>
    %cst_15 = arith.constant dense<0.000000e+00> : vector<8xf32>
    %13 = vector.multi_reduction <add>, %12, %cst_15 [1] : vector<8x32xf32> to vector<8xf32>
    %14 = vector.shape_cast %13 : vector<8xf32> to vector<8x1xf32>
    %cst_16 = arith.constant 3.200000e+01 : f32
    %15 = vector.broadcast %cst_16 : f32 to vector<8x1xf32>
    %16 = arith.divf %14, %15 : vector<8x1xf32>
    %17 = arith.mulf %11, %11 : vector<8x1xf32>
    %18 = arith.subf %16, %17 : vector<8x1xf32>
    %19 = vector.broadcast %11 : vector<8x1xf32> to vector<8x32xf32>
    %20 = arith.subf %7, %19 : vector<8x32xf32>
    %cst_17 = arith.constant 9.99999974E-6 : f32
    %21 = vector.broadcast %cst_17 : f32 to vector<8x1xf32>
    %22 = arith.addf %18, %21 : vector<8x1xf32>
    %23 = math.rsqrt %22 : vector<8x1xf32>
    %24 = vector.broadcast %23 : vector<8x1xf32> to vector<8x32xf32>
    %25 = arith.mulf %20, %24 : vector<8x32xf32>
    %26 = vector.broadcast %0 : vector<1x32xf32> to vector<8x32xf32>
    %27 = arith.mulf %25, %26 : vector<8x32xf32>
    %28 = vector.broadcast %1 : vector<1x32xf32> to vector<8x32xf32>
    %29 = arith.addf %27, %28 : vector<8x32xf32>
    %30 = arith.truncf %29 : vector<8x32xf32> to vector<8x32xbf16>
    %cst_18 = arith.constant dense<0.000000e+00> : vector<32x32xf32>
    %31 = tpu.matmul %2, %30, %cst_18 {dimension_numbers = #tpu.dot_dimension_numbers<[1], [0], [0], [1], [0, 0, 1, 1], [], []>} : vector<32x8xbf16>, vector<8x32xbf16>, vector<32x32xf32> -> vector<32x32xf32>
    %32 = vector.broadcast %4 : vector<32x1xf32> to vector<32x32xf32>
    %33 = arith.addf %31, %32 : vector<32x32xf32>
    %cst_19 = arith.constant 5.000000e-01 : f32
    %34 = vector.broadcast %cst_19 : f32 to vector<32x32xf32>
    %35 = arith.mulf %34, %33 : vector<32x32xf32>
    %cst_20 = arith.constant 0.707106769 : f32
    %36 = vector.broadcast %cst_20 : f32 to vector<32x32xf32>
    %37 = arith.mulf %33, %36 : vector<32x32xf32>
    %38 = math.erf %37 : vector<32x32xf32>
    %cst_21 = arith.constant 1.000000e+00 : f32
    %39 = vector.broadcast %cst_21 : f32 to vector<32x32xf32>
    %40 = arith.addf %39, %38 : vector<32x32xf32>
    %41 = arith.mulf %35, %40 : vector<32x32xf32>
    %42 = arith.truncf %41 : vector<32x32xf32> to vector<32x32xbf16>
    %cst_22 = arith.constant dense<0.000000e+00> : vector<8x32xf32>
    %43 = tpu.matmul %3, %42, %cst_22 {dimension_numbers = #tpu.dot_dimension_numbers<[1], [0], [0], [1], [0, 0, 1, 1], [], []>} : vector<8x32xbf16>, vector<32x32xbf16>, vector<8x32xf32> -> vector<8x32xf32>
    %44 = vector.broadcast %5 : vector<8x1xf32> to vector<8x32xf32>
    %45 = arith.addf %43, %44 : vector<8x32xf32>
    %46 = arith.addf %45, %7 : vector<8x32xf32>
    %cst_23 = arith.constant dense<0.000000e+00> : vector<8xf32>
    %47 = vector.multi_reduction <add>, %46, %cst_23 [1] : vector<8x32xf32> to vector<8xf32>
    %48 = vector.shape_cast %47 : vector<8xf32> to vector<8x1xf32>
    %cst_24 = arith.constant 3.200000e+01 : f32
    %49 = vector.broadcast %cst_24 : f32 to vector<8x1xf32>
    %50 = arith.divf %48, %49 : vector<8x1xf32>
    %51 = arith.mulf %46, %46 : vector<8x32xf32>
    %cst_25 = arith.constant dense<0.000000e+00> : vector<8xf32>
    %52 = vector.multi_reduction <add>, %51, %cst_25 [1] : vector<8x32xf32> to vector<8xf32>
    %53 = vector.shape_cast %52 : vector<8xf32> to vector<8x1xf32>
    %cst_26 = arith.constant 3.200000e+01 : f32
    %54 = vector.broadcast %cst_26 : f32 to vector<8x1xf32>
    %55 = arith.divf %53, %54 : vector<8x1xf32>
    %56 = arith.mulf %50, %50 : vector<8x1xf32>
    %57 = arith.subf %55, %56 : vector<8x1xf32>
    %58 = vector.broadcast %50 : vector<8x1xf32> to vector<8x32xf32>
    %59 = arith.subf %46, %58 : vector<8x32xf32>
    %cst_27 = arith.constant 9.99999974E-6 : f32
    %60 = vector.broadcast %cst_27 : f32 to vector<8x1xf32>
    %61 = arith.addf %57, %60 : vector<8x1xf32>
    %62 = math.rsqrt %61 : vector<8x1xf32>
    %63 = vector.broadcast %62 : vector<8x1xf32> to vector<8x32xf32>
    %64 = arith.mulf %59, %63 : vector<8x32xf32>
    %65 = vector.broadcast %0 : vector<1x32xf32> to vector<8x32xf32>
    %66 = arith.mulf %64, %65 : vector<8x32xf32>
    %67 = vector.broadcast %1 : vector<1x32xf32> to vector<8x32xf32>
    %68 = arith.addf %66, %67 : vector<8x32xf32>
    %69 = arith.truncf %68 : vector<8x32xf32> to vector<8x32xbf16>
    %c0_28 = arith.constant 0 : index
    %c0_29 = arith.constant 0 : index
    %70 = vector.load %arg8[%c0_28, %c0_29] : memref<32x128xbf16, #tpu.memory_space<vmem>>, vector<32x128xbf16>
    %cst_30 = arith.constant dense<0.000000e+00> : vector<8x128xf32>
    %71 = tpu.matmul %69, %70, %cst_30 {dimension_numbers = #tpu.dot_dimension_numbers<[1], [0], [0], [1], [0, 0, 1, 1], [], []>} : vector<8x32xbf16>, vector<32x128xbf16>, vector<8x128xf32> -> vector<8x128xf32>
    %c0_31 = arith.constant 0 : index
    %c0_32 = arith.constant 0 : index
    %72 = vector.load %arg9[%c0_31, %c0_32] : memref<1x128xf32, #tpu.memory_space<vmem>>, vector<1x128xf32>
    %73 = vector.broadcast %72 : vector<1x128xf32> to vector<8x128xf32>
    %74 = arith.addf %71, %73 : vector<8x128xf32>
    %cst_33 = arith.constant 5.000000e-01 : f32
    %75 = vector.broadcast %cst_33 : f32 to vector<8x128xf32>
    %76 = arith.mulf %75, %74 : vector<8x128xf32>
    %cst_34 = arith.constant 0.707106769 : f32
    %77 = vector.broadcast %cst_34 : f32 to vector<8x128xf32>
    %78 = arith.mulf %74, %77 : vector<8x128xf32>
    %79 = math.erf %78 : vector<8x128xf32>
    %cst_35 = arith.constant 1.000000e+00 : f32
    %80 = vector.broadcast %cst_35 : f32 to vector<8x128xf32>
    %81 = arith.addf %80, %79 : vector<8x128xf32>
    %82 = arith.mulf %76, %81 : vector<8x128xf32>
    %83 = arith.truncf %82 : vector<8x128xf32> to vector<8x128xbf16>
    %c0_36 = arith.constant 0 : index
    %c0_37 = arith.constant 0 : index
    %84 = vector.load %arg10[%c0_36, %c0_37] : memref<128x32xbf16, #tpu.memory_space<vmem>>, vector<128x32xbf16>
    %cst_38 = arith.constant dense<0.000000e+00> : vector<8x32xf32>
    %85 = tpu.matmul %83, %84, %cst_38 {dimension_numbers = #tpu.dot_dimension_numbers<[1], [0], [0], [1], [0, 0, 1, 1], [], []>} : vector<8x128xbf16>, vector<128x32xbf16>, vector<8x32xf32> -> vector<8x32xf32>
    %c0_39 = arith.constant 0 : index
    %c0_40 = arith.constant 0 : index
    %86 = vector.load %arg11[%c0_39, %c0_40] : memref<1x32xf32, #tpu.memory_space<vmem>>, vector<1x32xf32>
    %87 = vector.broadcast %86 : vector<1x32xf32> to vector<8x32xf32>
    %88 = arith.addf %85, %87 : vector<8x32xf32>
    %89 = arith.addf %88, %46 : vector<8x32xf32>
    %90 = vector.shape_cast %89 : vector<8x32xf32> to vector<1x8x32xf32>
    %c0_41 = arith.constant 0 : index
    %c0_42 = arith.constant 0 : index
    %c0_43 = arith.constant 0 : index
    %91 = vector.load %arg12[%c0_41, %c0_42, %c0_43] : memref<1x8x32xf32, #tpu.memory_space<vmem>>, vector<1x8x32xf32>
    tpu.vector_store %arg12[%c0_41, %c0_42, %c0_43], %90 {strides = array<i32>} : memref<1x8x32xf32, #tpu.memory_space<vmem>>, vector<1x8x32xf32>,
    return
  }
  func.func @transform_0(%arg0: i32) -> (i32, i32, i32) {
    %c0_i32 = arith.constant 0 : i32
    %c0_i32_0 = arith.constant 0 : i32
    %c0_i32_1 = arith.constant 0 : i32
    return %arg0, %c0_i32, %c0_i32_0 : i32, i32, i32
  }
  func.func @transform_1(%arg0: i32) -> (i32, i32) {
    %c0_i32 = arith.constant 0 : i32
    %c0_i32_0 = arith.constant 0 : i32
    %c0_i32_1 = arith.constant 0 : i32
    return %c0_i32, %c0_i32_0 : i32, i32
  }
  func.func @transform_2(%arg0: i32) -> (i32, i32) {
    %c0_i32 = arith.constant 0 : i32
    %c0_i32_0 = arith.constant 0 : i32
    %c0_i32_1 = arith.constant 0 : i32
    return %c0_i32, %c0_i32_0 : i32, i32
  }
  func.func @transform_3(%arg0: i32) -> (i32, i32) {
    %c0_i32 = arith.constant 0 : i32
    %c0_i32_0 = arith.constant 0 : i32
    %c0_i32_1 = arith.constant 0 : i32
    return %c0_i32, %c0_i32_0 : i32, i32
  }
  func.func @transform_4(%arg0: i32) -> (i32, i32) {
    %c0_i32 = arith.constant 0 : i32
    %c0_i32_0 = arith.constant 0 : i32
    %c0_i32_1 = arith.constant 0 : i32
    return %c0_i32, %c0_i32_0 : i32, i32
  }
  func.func @transform_5(%arg0: i32) -> (i32, i32) {
    %c0_i32 = arith.constant 0 : i32
    %c0_i32_0 = arith.constant 0 : i32
    %c0_i32_1 = arith.constant 0 : i32
    return %c0_i32, %c0_i32_0 : i32, i32
  }
  func.func @transform_6(%arg0: i32) -> (i32, i32) {
    %c0_i32 = arith.constant 0 : i32
    %c0_i32_0 = arith.constant 0 : i32
    %c0_i32_1 = arith.constant 0 : i32
    return %c0_i32, %c0_i32_0 : i32, i32
  }
  func.func @transform_7(%arg0: i32) -> (i32, i32) {
    %c0_i32 = arith.constant 0 : i32
    %c0_i32_0 = arith.constant 0 : i32
    %c0_i32_1 = arith.constant 0 : i32
    return %c0_i32, %c0_i32_0 : i32, i32
  }
  func.func @transform_8(%arg0: i32) -> (i32, i32) {
    %c0_i32 = arith.constant 0 : i32
    %c0_i32_0 = arith.constant 0 : i32
    %c0_i32_1 = arith.constant 0 : i32
    return %c0_i32, %c0_i32_0 : i32, i32
  }
  func.func @transform_9(%arg0: i32) -> (i32, i32) {
    %c0_i32 = arith.constant 0 : i32
    %c0_i32_0 = arith.constant 0 : i32
    %c0_i32_1 = arith.constant 0 : i32
    return %c0_i32, %c0_i32_0 : i32, i32
  }
  func.func @transform_10(%arg0: i32) -> (i32, i32) {
    %c0_i32 = arith.constant 0 : i32
    %c0_i32_0 = arith.constant 0 : i32
    %c0_i32_1 = arith.constant 0 : i32
    return %c0_i32, %c0_i32_0 : i32, i32
  }
  func.func @transform_11(%arg0: i32) -> (i32, i32, i32) {
    %c0_i32 = arith.constant 0 : i32
    %c0_i32_0 = arith.constant 0 : i32
    %c0_i32_1 = arith.constant 0 : i32
    return %arg0, %c0_i32, %c0_i32_0 : i32, i32, i32
  }
}

</mosaic_0001>

<bundles_post_ra>
// kernel: tpu_custom_call.1
= control target key start
LH: loop header
LB: loop body
LE: loop exit
PB: predicated region body
PF: predicated region fallthrough
CT: control target
= control target key end

     0   :  { %s1554_s0 = inlined_call_operand.vmem [shape: f32[2,8,32], index: 0, kind: input, shape index: {}]   ;;  %s1555_s1 = inlined_call_operand.vmem [shape: f32[1,32], index: 1, kind: input, shape index: {}]   ;;  %s1556_s2 = inlined_call_operand.vmem [shape: f32[1,32], index: 2, kind: input, shape index: {}]   ;;  %s1557_s3 = inlined_call_operand.vmem [shape: bf16[32,8], index: 3, kind: input, shape index: {}]   ;;  %s1558_s4 = inlined_call_operand.vmem [shape: f32[32,1], index: 4, kind: input, shape index: {}]   ;;  %s1559_s5 = inlined_call_operand.vmem [shape: bf16[8,32], index: 5, kind: input, shape index: {}]   ;;  %s1560_s6 = inlined_call_operand.vmem [shape: f32[8,1], index: 6, kind: input, shape index: {}]   ;;  %s1561_s7 = inlined_call_operand.vmem [shape: bf16[32,128], index: 7, kind: input, shape index: {}]   ;;  %s1562_s8 = inlined_call_operand.vmem [shape: f32[1,128], index: 8, kind: input, shape index: {}]   ;;  %s1563_s9 = inlined_call_operand.vmem [shape: bf16[128,32], index: 9, kind: input, shape index: {}]   ;;  %s1564_s10 = inlined_call_operand.vmem [shape: f32[1,32], index: 10, kind: input, shape index: {}]   ;;  %s1565_s11 = inlined_call_operand.hbm [shape: f32[2,8,32], index: 11, kind: output, shape index: {}]  }
   0x1   :  { %1566 = sst [smem:[#allocation5_spill]] %s1554_s0 }
   0x2   :  { %1567 = sst [smem:[#allocation6_spill]] %s1555_s1 }
   0x3   :  { %16 = vsyncpa [#allocation3], 0 }
   0x4   :  { %18 = vsyncpa [#allocation3 + $0x1], 0  ;;  %s1232_s17 = smov 0   ;;  %s1234_s18 = smov 0  }
   0x5   :  { %s1236_s19 = smov 0   ;;  %s1238_s20 = smov 0  }
   0x6 LB: > { %s1253_s21 = sadd.s32 4294967295, %s1168_s20   ;;  %s963_s22 = sadd.s32 4294967294, %s1168_s20   ;;  %s1168_s20 = sphi %s1238_s20, %s1579_s20   ;;  %s1164_s19 = sphi %s1236_s19, %s1578_s19   ;;  %s1160_s18 = sphi %s1234_s18, %s1577_s18   ;;  %s1156_s17 = sphi %s1232_s17, %s1576_s17  }
   0x7   : > { %s1257_s23 = sadd.s32 1, %s1168_s20   ;;  %s267_s24 = sadd.s32 1, %s1164_s19 }
   0x8   : > { %s264_s25 = ssub.s32 %s1168_s20, %s1257_s23  ;;  %p277_p0 = scmp.ne.s32.totalorder %s1164_s19, %s1160_s18 }
   0x9   : > { %p265_p1 = scmp.eq.s32.totalorder %s264_s25, 0  ;;  %p278_p2 = scmp.eq.s32.totalorder %s1253_s21, 1 }
   0xa   : > { %p283_p3 = scmp.ne.s32.totalorder %s1160_s18, %s1156_s17  ;;  %p284_p4 = scmp.eq.s32.totalorder %s963_s22, 1 }
   0xb   : > { %s1268_s26 = scalar_select %p265_p1, %s1164_s19, %s267_s24  }
   0xc   : > { %p1270_p5 = por %p278_p2, %p277_p0  ;;  %p1274_p6 = por %p284_p4, %p283_p3 }
   0xd   : > { %p966_p7 = scmp.ge.s32.totalorder %s1168_s20, 1  ;;  %p339_p8 = scmp.lt.s32.totalorder %s1168_s20, 3 }
   0xf   : > { %p340_p9 = pnand %p966_p7, %p339_p8 }
  0x10   : > { %p378_p10 = scmp.lt.s32.totalorder (!%p340_p9), %s1253_s21, 1  ;;  %s1570_s0 = sld [smem:[#allocation5_spill]] (!%p340_p9) }
  0x11   : > { %343 = sbr.rel (%p340_p9) target bundleno = 1008 (0x3f0), region = 64  ;;  %s1571_s1 = sld [smem:[#allocation6_spill]] (!%p340_p9) }
  0x12   : > { %s375_s22 = sand.u32 (!%p340_p9), 1, %s1160_s18   ;;  %s1027_s25 = sshll.u32 (!%p340_p9), %s1253_s21, 3 }
  0x13   : > { %s967_s24 = sshll.u32 (!%p340_p9), %s375_s22, 3 }
  0x14   : > { %s377_s15 = scalar_lea.vmem (!%p340_p9), [#allocation2], %s967_s24  ;;  %s1126_s24 = scalar_lea.hbm (!%p340_p9), %s1565_s11, 16 }
  0x15   : > { %s901_s16 = sshll.u32 (!%p340_p9), %s377_s15, 4  ;;  %s902_s16 = int_to_ptr.vmem [resolvable:$true] %s901_s16 }
  0x16   : > { %s379_s29 = scalar_select %p378_p10, %s1253_s21, 1  ;;  %vm396_vm0 = vcmask 261120   ;;  %v1170_v4 = vmov 32.0   ;;  %v392_v23 = vld [vmem:[%s1558_s4 + $0x10] sm:$0xff]  ;;  %v390_v24 = vld [vmem:[%s1558_s4] sm:$0xff]  ;;  %v1171_v26 = vmov 0  }
  0x17   : > { %1090 = vrcp.f32 %v1170_v4  ;;  %1083 = vset.pattern.permute.xlu1 %v1171_v26  ;;  %1084 = vset.pattern.permute.xlu2 %v1171_v26  ;;  %v1306_v28 = vld [vmem:[%s1571_s1] ss:$0 sm:$0xff]  ;;  %v393_v33 = vld [vmem:[%s1558_s4 + $0x18] sm:$0xff]  ;;  %v391_v34 = vld [vmem:[%s1558_s4 + $0x8] sm:$0xff]  ;;  %vm474_vm5 = vcmask 1043456   ;;  %vm467_vm6 = vcmask 64512  }
  0x18   : > { %s968_s30 = sshll.u32 %s379_s29, 3  ;;  %449 = vperm.xlu1 %1083, %v392_v23   ;;  %439 = vperm.xlu2 %1084, %v390_v24   ;;  %v1311_v31 = vld [vmem:[%s1556_s2] ss:$0 sm:$0xff]  ;;  %v1031_v39 = vld [vmem:[%s1557_s3 + $0x8] sm:$0xff]  ;;  %s889_s21 = scalar_lea.sflag [#allocation3], %s375_s22 }
  0x19   : > { %s381_s14 = scalar_lea.vmem %s1570_s0, %s968_s30  ;;  %1085 = vset.pattern.permute.xlu0 %v1171_v26  ;;  %v1030_v38 = vld [vmem:[%s1557_s3] sm:$0xff] }
  0x1a   : > { %v1285_v0 = vld [vmem:[%s381_s14] sm:$0xff]  ;;  %s899_s14 = scalar_lea.hbm %s1565_s11, %s1027_s25 }
  0x1b   : > { %v397_v1 = vsel %vm396_vm0, %v1285_v0, 0.0  ;;  %v408_v2 = vmul.f32 %v1285_v0, %v1285_v0  ;;  %s903_s0 = sshll.u32 %s899_s14, 4  ;;  %s904_s0 = int_to_ptr.hbm [resolvable:$true] %s903_s0 }
  0x1c   : > { %398 = vadd.xlane.f32.xlu0 %v397_v1  ;;  %s1120_s1 = sshra.s32 %s904_s0, 4  ;;  %s1121_s1 = int_to_ptr.hbm [resolvable:$true] %s1120_s1 }
  0x1d   : > { %v409_v3 = vsel %vm396_vm0, %v408_v2, 0.0  ;;  %v1091_v5 = vpop.eup %1090  ;;  %s1122_s29 = scalar_lea.hbm %s1121_s1, 8  ;;  %p1127_p0 = scmp.lt.s32.totalorder %s1121_s1, %s1565_s11 }
  0x1e   : > { %v401_v6 = vmul.f32 32.0, %v1091_v5  ;;  %vm405_vm1 = vweird.f32 %v1091_v5  ;;  %p1123_p11 = scmp.ne.s32.totalorder %s1121_s1, %s1122_s29  ;;  %p1128_p1 = scmp.lt.s32.totalorder %s1126_s24, %s1122_s29 }
  0x20   : > { %v402_v7 = vsub.f32 1.0, %v401_v6  ;;  %454 = vperm.xlu1 %1083, %v393_v33   ;;  %444 = vperm.xlu2 %1084, %v391_v34   ;;  %p1124_p12 = pnand %p1123_p11, %p1270_p5  ;;  %p1129_p2 = por %p1128_p1, %p1127_p0 }
  0x22   : > { %v403_v8 = vmul.f32 %v1091_v5, %v402_v7  ;;  %p1125_p13 = pneg %p1124_p12 }
  0x24   : > { %410 = vadd.xlane.f32.xlu0 %v409_v3  ;;  %v404_v9 = vadd.f32 %v1091_v5, %v403_v8  ;;  %p1130_p3 = pnand %p1129_p2, %p1125_p13 }
  0x26   : > { %v1292_v11 = vsel %vm405_vm1, %v1091_v5, %v404_v9 }
  0x72   : > { %v440_v40 = vpop.permute.xlu2 %439 }
  0x7a   : > { %v445_v45 = vpop.permute.xlu2 %444 }
  0x8a   : > { %v450_v53 = vpop.permute.xlu1 %449 }
  0x8f   : > { %v399_v10 = vpop.xlane.xlu0 %398 }
  0x90   : > { %v407_v12 = vmul.f32 %v1292_v11, %v399_v10 }
  0x92   : > { %v413_v14 = vmul.f32 %v407_v12, %v407_v12  ;;  %v415_v27 = vsub.f32 %v1285_v0, %v407_v12  ;;  %v455_v6 = vpop.permute.xlu1 %454 }
  0x97   : > { %v411_v13 = vpop.xlane.xlu0 %410 }
  0x98   : > { %v412_v15 = vmul.f32 %v411_v13, %v1292_v11 }
  0x9a   : > { %v414_v16 = vsub.f32 %v412_v15, %v413_v14 }
  0x9c   : > { %v416_v17 = vadd.f32 1e-05, %v414_v16 }
  0x9e   : > { %1092 = vrsqrt.f32 %v416_v17  ;;  %vm423_vm3 = vweird.f32 %v416_v17 }
  0xa4   : > { %v1093_v18 = vpop.eup %1092 }
  0xa5   : > { %v418_v19 = vmul.f32 %v1093_v18, %v416_v17  ;;  %vm424_vm2 = vweird.f32 %v1093_v18 }
  0xa6   : > { %vm425_vm4 = vmor %vm423_vm3, %vm424_vm2 }
  0xa7   : > { %v419_v20 = vmul.f32 %v1093_v18, %v418_v19 }
  0xa9   : > { %v420_v21 = vmul.f32 0.5, %v419_v20 }
  0xab   : > { %v421_v22 = vsub.f32 1.5, %v420_v21 }
  0xad   : > { %v422_v25 = vmul.f32 %v1093_v18, %v421_v22 }
  0xaf   : > { %v426_v29 = vsel %vm425_vm4, %v1093_v18, %v422_v25 }
  0xb0   : > { %v427_v30 = vmul.f32 %v426_v29, %v415_v27 }
  0xb2   : > { %v431_v32 = vmul.f32 %v1306_v28, %v427_v30 }
  0xb4   : > { %v435_v35 = vadd.f32 %v1311_v31, %v431_v32 }
  0xb6   : > { %v436_v36 = vpack.c.bf16 %v435_v35, %v435_v35 }
  0xb8   : > { %v476_v37 = vsel %vm474_vm5, %v436_v36, 0 }
  0xb9   : > { %485 = vmatpush.bf16.msra.mxu0 %v476_v37 }
  0xbc   : > { %977 = vmatmul.msk.bf16.vlgmr.msra.gmra.mxu0 %vm467_vm6, %v1030_v38 }
  0xcc   : > { %978 = vmatmul.msk.bf16.gmra.mxu0 %vm467_vm6, %v1031_v39 }
 0x139   : > { %v487_v41 = vpop.f32.mrf.mxu0 }
 0x13a   : > { %v1327_v42 = vadd.f32 %v487_v41, %v440_v40 }
 0x13c   : > { %v1330_v43 = vmul.f32 0.70710677, %v1327_v42 }
 0x13e   : > { %v505_v44 = vmul.f32 %v1330_v43, %v1330_v43 }
 0x140   : > { %v1334_v46 = vmin.f32 %v505_v44, 16.0 }
 0x141   : > { %v489_v47 = vpop.f32.mrf.mxu0 }
 0x142   : > { %v1336_v48 = vadd.f32 %v489_v47, %v445_v45  ;;  %v518_v49 = vmul.f32 3.8918573e-05, %v1334_v46  ;;  %v507_v4 = vmul.f32 2.1237322e-06, %v1334_v46 }
 0x144   : > { %v1340_v50 = vmul.f32 0.70710677, %v1336_v48  ;;  %v519_v51 = vadd.f32 0.001143296, %v518_v49  ;;  %v508_v16 = vadd.f32 0.00028619796, %v507_v4 }
 0x146   : > { %v545_v52 = vmul.f32 %v1340_v50, %v1340_v50  ;;  %v520_v54 = vmul.f32 %v519_v51, %v1334_v46  ;;  %v509_v25 = vmul.f32 %v508_v16, %v1334_v46 }
 0x148   : > { %v1345_v55 = vmin.f32 %v545_v52, 16.0  ;;  %v521_v57 = vadd.f32 0.014752088, %v520_v54  ;;  %v510_v37 = vadd.f32 0.0036580483, %v509_v25 }
 0x149   : > { %v492_v56 = vpop.f32.mrf.mxu0 }
 0x14a   : > { %v1347_v58 = vadd.f32 %v492_v56, %v450_v53  ;;  %v558_v59 = vmul.f32 3.8918573e-05, %v1345_v55  ;;  %v522_v60 = vmul.f32 %v521_v57, %v1334_v46  ;;  %v547_v5 = vmul.f32 2.1237322e-06, %v1345_v55 }
 0x14b   : > { %v511_v52 = vmul.f32 %v510_v37, %v1334_v46 }
 0x14c   : > { %v1352_v61 = vmul.f32 0.70710677, %v1347_v58  ;;  %v523_v62 = vadd.f32 0.112945676, %v522_v60  ;;  %v559_v63 = vadd.f32 0.001143296, %v558_v59 }
 0x14d   : > { %v548_v17 = vadd.f32 0.00028619796, %v547_v5 }
 0x14e   : > { %v585_v1 = vmul.f32 %v1352_v61, %v1352_v61  ;;  %v524_v2 = vmul.f32 %v523_v62, %v1334_v46  ;;  %v560_v3 = vmul.f32 %v559_v63, %v1345_v55 }
 0x14f   : > { %v549_v26 = vmul.f32 %v548_v17, %v1345_v55 }
 0x150   : > { %v1360_v7 = vmin.f32 %v585_v1, 16.0  ;;  %v561_v9 = vadd.f32 0.014752088, %v560_v3  ;;  %v525_v12 = vadd.f32 0.4994258, %v524_v2 }
 0x151   : > { %v494_v8 = vpop.f32.mrf.mxu0  ;;  %v550_v38 = vadd.f32 0.0036580483, %v549_v26  ;;  %v512_v2 = vadd.f32 0.05243302, %v511_v52 }
 0x152   : > { %v1362_v10 = vadd.f32 %v494_v8, %v455_v6  ;;  %v587_v13 = vmul.f32 2.1237322e-06, %v1360_v7  ;;  %v598_v14 = vmul.f32 3.8918573e-05, %v1360_v7  ;;  %v562_v15 = vmul.f32 %v561_v9, %v1345_v55 }
 0x153   : > { %v526_v21 = vmul.f32 %v525_v12, %v1334_v46  ;;  %v551_v56 = vmul.f32 %v550_v38, %v1345_v55 }
 0x154   : > { %v588_v18 = vadd.f32 0.00028619796, %v587_v13  ;;  %v1368_v19 = vmul.f32 0.70710677, %v1362_v10  ;;  %v599_v20 = vadd.f32 0.001143296, %v598_v14  ;;  %v513_v14 = vmul.f32 %v512_v2, %v1334_v46 }
 0x155   : > { %v563_v22 = vadd.f32 0.112945676, %v562_v15  ;;  %v1379_v32 = vadd.f32 1.0, %v526_v21  ;;  %v552_v4 = vadd.f32 0.05243302, %v551_v56 }
 0x156   : > { %v625_v23 = vmul.f32 %v1368_v19, %v1368_v19  ;;  %v600_v24 = vmul.f32 %v599_v20, %v1360_v7  ;;  %v589_v27 = vmul.f32 %v588_v18, %v1360_v7 }
 0x157   : > { %v564_v33 = vmul.f32 %v563_v22, %v1345_v55  ;;  %1094 = vrcp.f32 %v1379_v32  ;;  %v553_v16 = vmul.f32 %v552_v4, %v1345_v55  ;;  %vm533_vm7 = vweird.f32 %v1379_v32 }
 0x158   : > { %v1377_v29 = vmin.f32 %v625_v23, 16.0  ;;  %v601_v30 = vadd.f32 0.014752088, %v600_v24  ;;  %v590_v40 = vadd.f32 0.0036580483, %v589_v27  ;;  %v539_v56 = vand.u32 2147483648, %v1379_v32 }
 0x159   : > { %v565_v39 = vadd.f32 0.4994258, %v564_v33  ;;  %v514_v24 = vadd.f32 0.18741608, %v513_v14  ;;  %v554_v27 = vadd.f32 0.18741608, %v553_v16 }
 0x15a   : > { %v627_v34 = vmul.f32 2.1237322e-06, %v1377_v29  ;;  %v602_v35 = vmul.f32 %v601_v30, %v1360_v7  ;;  %v638_v36 = vmul.f32 3.8918573e-05, %v1377_v29  ;;  %v591_v57 = vmul.f32 %v590_v40, %v1360_v7 }
 0x15b   : > { %v566_v47 = vmul.f32 %v565_v39, %v1345_v55  ;;  %v515_v38 = vmul.f32 %v514_v24, %v1334_v46  ;;  %v555_v40 = vmul.f32 %v554_v27, %v1345_v55  ;;  %v394_v46 = vld [vmem:[%s1560_s6] sm:$0xff] }
 0x15c   : > { %v628_v41 = vadd.f32 0.00028619796, %v627_v34  ;;  %v603_v44 = vadd.f32 0.112945676, %v602_v35  ;;  %v639_v45 = vadd.f32 0.001143296, %v638_v36  ;;  %677 = vperm.xlu0 %1085, %v394_v46  }
 0x15d   : > { %v1391_v54 = vadd.f32 1.0, %v566_v47  ;;  %v1397_v1 = vpop.eup %1094  ;;  %v592_v5 = vadd.f32 0.05243302, %v591_v57  ;;  %v516_v2 = vadd.f32 1.1283791, %v515_v38 }
 0x15e   : > { %v629_v49 = vmul.f32 %v628_v41, %v1377_v29  ;;  %v604_v51 = vmul.f32 %v603_v44, %v1360_v7  ;;  %v640_v53 = vmul.f32 %v639_v45, %v1377_v29  ;;  %v529_v12 = vmul.f32 %v1397_v1, %v1379_v32 }
 0x15f   : > { %1096 = vrcp.f32 %v1391_v54  ;;  %v593_v17 = vmul.f32 %v592_v5, %v1360_v7  ;;  %vm534_vm8 = vweird.f32 %v1397_v1  ;;  %v537_v44 = vand.u32 2147483647, %v1379_v32 }
 0x160   : > { %v605_v59 = vadd.f32 0.4994258, %v604_v51  ;;  %v630_v60 = vadd.f32 0.0036580483, %v629_v49  ;;  %v641_v62 = vadd.f32 0.014752088, %v640_v53  ;;  %vm1432_vm12 = vmor %vm533_vm7, %vm534_vm8  ;;  %vm573_vm14 = vweird.f32 %v1391_v54 }
 0x161   : > { %v530_v22 = vsub.f32 1.0, %v529_v12  ;;  %v594_v30 = vadd.f32 0.18741608, %v593_v17  ;;  %v579_v57 = vand.u32 2147483648, %v1391_v54  ;;  %vm538_vm2 = vcmp.eq.f32.partialorder %v537_v44, 8.507059e+37 }
 0x162   : > { %v606_v63 = vmul.f32 %v605_v59, %v1360_v7  ;;  %v642_v3 = vmul.f32 %v641_v62, %v1377_v29  ;;  %v631_v8 = vmul.f32 %v630_v60, %v1377_v29  ;;  %v556_v59 = vadd.f32 1.1283791, %v555_v40 }
 0x163   : > { %v531_v36 = vmul.f32 %v1397_v1, %v530_v22  ;;  %v595_v41 = vmul.f32 %v594_v30, %v1360_v7  ;;  %v577_v62 = vand.u32 2147483647, %v1391_v54  ;;  %v580_v12 = vor.u32 1.1754944e-38, %v579_v57 }
 0x164   : > { %v607_v6 = vadd.f32 1.0, %v606_v63  ;;  %v643_v9 = vadd.f32 0.112945676, %v642_v3  ;;  %v632_v20 = vadd.f32 0.05243302, %v631_v8  ;;  %v557_v14 = vmul.f32 %v556_v59, %v1340_v50 }
 0x165   : > { %v1403_v13 = vpop.eup %1096  ;;  %v532_v52 = vadd.f32 %v1397_v1, %v531_v36  ;;  %v596_v60 = vadd.f32 1.1283791, %v595_v41  ;;  %vm578_vm3 = vcmp.eq.f32.partialorder %v577_v62, 8.507059e+37  ;;  %v500_v40 = vmul.f32 0.5, %v1362_v10 }
 0x166   : > { %1098 = vrcp.f32 %v607_v6  ;;  %v644_v15 = vmul.f32 %v643_v9, %v1377_v29  ;;  %v569_v18 = vmul.f32 %v1403_v13, %v1391_v54  ;;  %v633_v33 = vmul.f32 %v632_v20, %v1377_v29 }
 0x167   : > { %v619_v49 = vand.u32 2147483648, %v607_v6  ;;  %v617_v51 = vand.u32 2147483647, %v607_v6  ;;  %vm574_vm10 = vweird.f32 %v1403_v13  ;;  %vm613_vm11 = vweird.f32 %v607_v6 }
 0x168   : > { %v645_v21 = vadd.f32 0.4994258, %v644_v15  ;;  %v570_v23 = vsub.f32 1.0, %v569_v18  ;;  %v634_v45 = vadd.f32 0.18741608, %v633_v33  ;;  %vm1444_vm15 = vmor %vm573_vm14, %vm574_vm10  ;;  %v536_v8 = vsel %vm1432_vm12, %v1397_v1, %v532_v52 }
 0x169   : > { %v620_v5 = vor.u32 1.1754944e-38, %v619_v49  ;;  %vm618_vm1 = vcmp.eq.f32.partialorder %v617_v51, 8.507059e+37  ;;  %v540_v9 = vor.u32 1.1754944e-38, %v539_v56  ;;  %v597_v15 = vmul.f32 %v596_v60, %v1352_v61  ;;  %v1033_v60 = vld [vmem:[%s1561_s7 + $0x8] sm:$0xff] }
 0x16a   : > { %v646_v25 = vmul.f32 %v645_v21, %v1377_v29  ;;  %v571_v37 = vmul.f32 %v1403_v13, %v570_v23  ;;  %v635_v3 = vmul.f32 %v634_v45, %v1377_v29  ;;  %v517_v23 = vmul.f32 %v516_v2, %v1330_v43  ;;  %753 = vmatpush.bf16.msra.mxu2 %v1033_v60 }
 0x16b   : > { %v541_v20 = vsel %vm538_vm2, %v540_v9, %v536_v8  ;;  %v499_v43 = vmul.f32 0.5, %v1347_v58  ;;  %v498_v44 = vmul.f32 0.5, %v1336_v48  ;;  %v497_v49 = vmul.f32 0.5, %v1327_v42  ;;  %v389_v58 = vld [vmem:[%s1559_s5] sm:$0xf] }
 0x16c   : > { %v1099_v26 = vpop.eup %1098  ;;  %v1413_v35 = vadd.f32 1.0, %v646_v25  ;;  %v572_v53 = vadd.f32 %v1403_v13, %v571_v37  ;;  %v636_v17 = vadd.f32 1.1283791, %v635_v3  ;;  %v542_v25 = vmul.f32 %v541_v20, %v517_v23  ;;  %v1041_v20 = vld [vmem:[%s1563_s9 + $0x38] sm:$0xff] }
 0x16d   : > { %v609_v34 = vmul.f32 %v1099_v26, %v607_v6  ;;  %vm614_vm9 = vweird.f32 %v1099_v26  ;;  %873 = vmatpush.bf16.msra.mxu3 %v1041_v20 }
 0x16e   : > { %1100 = vrcp.f32 %v1413_v35  ;;  %vm615_vm13 = vmor %vm613_vm11, %vm614_vm9  ;;  %v576_v54 = vsel %vm1444_vm15, %v1403_v13, %v572_v53  ;;  %v659_v18 = vand.u32 2147483648, %v1413_v35  ;;  %v657_v13 = vand.u32 2147483647, %v1413_v35 }
 0x16f   : > { %v610_v39 = vsub.f32 1.0, %v609_v34  ;;  %v581_v21 = vsel %vm578_vm3, %v580_v12, %v576_v54  ;;  %vm653_vm5 = vweird.f32 %v1413_v35 }
 0x170   : > { %v582_v50 = vmul.f32 %v581_v21, %v557_v14  ;;  %v660_v61 = vor.u32 1.1754944e-38, %v659_v18  ;;  %vm658_vm7 = vcmp.eq.f32.partialorder %v657_v13, 8.507059e+37  ;;  %v1088_v21 = vld [vmem:[%s1562_s8] ss:$0 sm:$0xff] }
 0x171   : > { %v611_v47 = vmul.f32 %v1099_v26, %v610_v39  ;;  %v979_v39 = vclamps-f32 %v542_v25, 1.0 }
 0x172   : > { %v980_v36 = vclamps-f32 %v582_v50, 1.0 }
 0x173   : > { %v612_v55 = vadd.f32 %v1099_v26, %v611_v47 }
 0x174   : > { %v1101_v63 = vpop.eup %1100  ;;  %v666_v41 = vadd.f32 1.0, %v980_v36  ;;  %v1036_v36 = vld [vmem:[%s1563_s9 + $0x10] sm:$0xff] }
 0x175   : > { %v616_v4 = vsel %vm615_vm13, %v1099_v26, %v612_v55  ;;  %v649_v6 = vmul.f32 %v1101_v63, %v1413_v35  ;;  %vm654_vm4 = vweird.f32 %v1101_v63  ;;  %v637_v26 = vmul.f32 %v636_v17, %v1368_v19 }
 0x176   : > { %v621_v29 = vsel %vm618_vm1, %v620_v5, %v616_v4  ;;  %vm655_vm6 = vmor %vm653_vm5, %vm654_vm4  ;;  %v665_v19 = vadd.f32 1.0, %v979_v39  ;;  %v670_v51 = vmul.f32 %v666_v41, %v498_v44  ;;  %v1034_v44 = vld [vmem:[%s1563_s9] sm:$0xff] }
 0x177   : > { %v650_v16 = vsub.f32 1.0, %v649_v6  ;;  %v622_v1 = vmul.f32 %v621_v29, %v597_v15 }
 0x178   : > { %v669_v52 = vmul.f32 %v665_v19, %v497_v49 }
 0x179   : > { %v651_v22 = vmul.f32 %v1101_v63, %v650_v16  ;;  %v981_v27 = vclamps-f32 %v622_v1, 1.0  ;;  %v1040_v1 = vld [vmem:[%s1563_s9 + $0x30] sm:$0xff] }
 0x17a   : > { %v673_v53 = vpack.c.bf16 %v670_v51, %v669_v52  ;;  %874 = vmatpush.bf16.msra.mxu3 %v1040_v1 }
 0x17b   : > { %v652_v24 = vadd.f32 %v1101_v63, %v651_v22  ;;  %v667_v38 = vadd.f32 1.0, %v981_v27 }
 0x17d   : > { %v656_v30 = vsel %vm655_vm6, %v1101_v63, %v652_v24  ;;  %v671_v45 = vmul.f32 %v667_v38, %v499_v43  ;;  %v1038_v24 = vld [vmem:[%s1563_s9 + $0x20] sm:$0xff]  ;;  %v1035_v43 = vld [vmem:[%s1563_s9 + $0x8] sm:$0xff] }
 0x17e   : > { %v661_v33 = vsel %vm658_vm7, %v660_v61, %v656_v30 }
 0x17f   : > { %v662_v34 = vmul.f32 %v661_v33, %v637_v26  ;;  %v1037_v26 = vld [vmem:[%s1563_s9 + $0x18] sm:$0xff] }
 0x181   : > { %v982_v37 = vclamps-f32 %v662_v34, 1.0 }
 0x183   : > { %v668_v35 = vadd.f32 1.0, %v982_v37 }
 0x185   : > { %v672_v47 = vmul.f32 %v668_v35, %v500_v40 }
 0x187   : > { %v674_v46 = vpack.c.bf16 %v672_v47, %v671_v45 }
 0x189   : > { %689 = vmatpush.bf16.msra.mxu1 %v674_v46 }
 0x18d   : > { %690 = vmatpush.bf16.msra.mxu1 %v673_v53 }
 0x190   : > { %983 = vmatmul.msk.bf16.vlgmr.msra.gmra.mxu1 %vm396_vm0, %v389_v58 }
 0x1ce   : > { %v678_v10 = vpop.permute.xlu0 %677 }
 0x20d   : > { %v692_v55 = vpop.f32.mrf.mxu1 }
 0x20e   : > { %v693_v48 = vadd.f32 %v692_v55, %v678_v10 }
 0x210   : > { %v1471_v7 = vadd.f32 %v693_v48, %v1285_v0  ;;  %v1032_v0 = vld [vmem:[%s1561_s7] sm:$0xff] }
 0x211   : > { %754 = vmatpush.bf16.msra.mxu2 %v1032_v0 }
 0x212   : > { %v697_v42 = vsel %vm396_vm0, %v1471_v7, 0.0  ;;  %v701_v56 = vmul.f32 %v1471_v7, %v1471_v7 }
 0x213   : > { %698 = vadd.xlane.f32.xlu1 %v697_v42 }
 0x214   : > { %v702_v57 = vsel %vm396_vm0, %v701_v56, 0.0 }
 0x215   : > { %v694_v59 = vpop.f32.mrf.mxu1  ;;  %703 = vadd.xlane.f32.xlu2 %v702_v57 }
 0x286   : > { %v699_v62 = vpop.xlane.xlu1 %698 }
 0x287   : > { %v700_v63 = vmul.f32 %v699_v62, %v1292_v11 }
 0x288   : > { %v704_v2 = vpop.xlane.xlu2 %703 }
 0x289   : > { %v706_v3 = vmul.f32 %v700_v63, %v700_v63  ;;  %v705_v4 = vmul.f32 %v704_v2, %v1292_v11  ;;  %v708_v14 = vsub.f32 %v1471_v7, %v700_v63 }
 0x28b   : > { %v707_v5 = vsub.f32 %v705_v4, %v706_v3 }
 0x28d   : > { %v709_v32 = vadd.f32 1e-05, %v707_v5 }
 0x28f   : > { %1102 = vrsqrt.f32 %v709_v32  ;;  %vm716_vm9 = vweird.f32 %v709_v32 }
 0x295   : > { %v1103_v6 = vpop.eup %1102 }
 0x296   : > { %v711_v8 = vmul.f32 %v1103_v6, %v709_v32  ;;  %vm717_vm8 = vweird.f32 %v1103_v6 }
 0x297   : > { %vm718_vm10 = vmor %vm716_vm9, %vm717_vm8 }
 0x298   : > { %v712_v54 = vmul.f32 %v1103_v6, %v711_v8  ;;  %v1089_v8 = vld [vmem:[%s1564_s10] ss:$0 sm:$0xff] }
 0x29a   : > { %v713_v29 = vmul.f32 0.5, %v712_v54 }
 0x29c   : > { %v714_v9 = vsub.f32 1.5, %v713_v29 }
 0x29e   : > { %v715_v12 = vmul.f32 %v1103_v6, %v714_v9 }
 0x2a0   : > { %v719_v15 = vsel %vm718_vm10, %v1103_v6, %v715_v12 }
 0x2a1   : > { %v720_v16 = vmul.f32 %v719_v15, %v708_v14 }
 0x2a3   : > { %v721_v17 = vmul.f32 %v1306_v28, %v720_v16 }
 0x2a5   : > { %v722_v11 = vadd.f32 %v1311_v31, %v721_v17  ;;  %v1039_v31 = vld [vmem:[%s1563_s9 + $0x28] sm:$0xff] }
 0x2a6   : > { %875 = vmatpush.bf16.msra.mxu3 %v1039_v31 }
 0x2a7   : > { %v723_v18 = vpack.c.bf16 %v722_v11, %v722_v11 }
 0x2a9   : > { %992 = vmatmul.msk.bf16.vlgmr.msra.gmra.mxu2 %vm396_vm0, %v723_v18 }
 0x2aa   : > { %876 = vmatpush.bf16.msra.mxu3 %v1038_v24 }
 0x2ae   : > { %877 = vmatpush.bf16.msra.mxu3 %v1037_v26 }
 0x2b2   : > { %878 = vmatpush.bf16.msra.mxu3 %v1036_v36 }
 0x2b6   : > { %879 = vmatpush.bf16.msra.mxu3 %v1035_v43 }
 0x2ba   : > { %880 = vmatpush.bf16.msra.mxu3 %v1034_v44 }
 0x32c   : > { %v756_v22 = vpop.f32.mrf.mxu2 }
 0x32d   : > { %v757_v28 = vadd.f32 %v1088_v21, %v756_v22 }
 0x32f   : > { %v761_v13 = vmul.f32 0.70710677, %v757_v28  ;;  %v760_v4 = vmul.f32 0.5, %v757_v28 }
 0x331   : > { %v762_v23 = vmul.f32 %v761_v13, %v761_v13 }
 0x333   : > { %v763_v50 = vmin.f32 %v762_v23, 16.0 }
 0x334   : > { %v758_v61 = vpop.f32.mrf.mxu2 }
 0x335   : > { %v764_v25 = vmul.f32 2.1237322e-06, %v763_v50  ;;  %v775_v27 = vmul.f32 3.8918573e-05, %v763_v50 }
 0x337   : > { %v765_v30 = vadd.f32 0.00028619796, %v764_v25  ;;  %v776_v33 = vadd.f32 0.001143296, %v775_v27 }
 0x339   : > { %v766_v34 = vmul.f32 %v765_v30, %v763_v50  ;;  %v777_v37 = vmul.f32 %v776_v33, %v763_v50 }
 0x33b   : > { %v778_v38 = vadd.f32 0.014752088, %v777_v37  ;;  %v767_v39 = vadd.f32 0.0036580483, %v766_v34 }
 0x33d   : > { %v779_v40 = vmul.f32 %v778_v38, %v763_v50  ;;  %v768_v41 = vmul.f32 %v767_v39, %v763_v50 }
 0x33f   : > { %v780_v35 = vadd.f32 0.112945676, %v779_v40  ;;  %v769_v19 = vadd.f32 0.05243302, %v768_v41 }
 0x341   : > { %v781_v45 = vmul.f32 %v780_v35, %v763_v50  ;;  %v770_v51 = vmul.f32 %v769_v19, %v763_v50 }
 0x343   : > { %v782_v47 = vadd.f32 0.4994258, %v781_v45  ;;  %v771_v52 = vadd.f32 0.18741608, %v770_v51 }
 0x345   : > { %v783_v49 = vmul.f32 %v782_v47, %v763_v50  ;;  %v772_v58 = vmul.f32 %v771_v52, %v763_v50 }
 0x347   : > { %v784_v46 = vadd.f32 1.0, %v783_v49  ;;  %v773_v42 = vadd.f32 1.1283791, %v772_v58 }
 0x349   : > { %1104 = vrcp.f32 %v784_v46  ;;  %v796_v48 = vand.u32 2147483648, %v784_v46  ;;  %v794_v57 = vand.u32 2147483647, %v784_v46  ;;  %vm790_vm12 = vweird.f32 %v784_v46 }
 0x34a   : > { %v774_v0 = vmul.f32 %v773_v42, %v761_v13 }
 0x34b   : > { %v797_v60 = vor.u32 1.1754944e-38, %v796_v48  ;;  %vm795_vm14 = vcmp.eq.f32.partialorder %v794_v57, 8.507059e+37 }
 0x34f   : > { %v1105_v53 = vpop.eup %1104 }
 0x350   : > { %v786_v10 = vmul.f32 %v1105_v53, %v784_v46  ;;  %vm791_vm11 = vweird.f32 %v1105_v53 }
 0x351   : > { %vm792_vm13 = vmor %vm790_vm12, %vm791_vm11 }
 0x352   : > { %v787_v55 = vsub.f32 1.0, %v786_v10 }
 0x354   : > { %v788_v56 = vmul.f32 %v1105_v53, %v787_v55 }
 0x356   : > { %v789_v59 = vadd.f32 %v1105_v53, %v788_v56 }
 0x358   : > { %v793_v62 = vsel %vm792_vm13, %v1105_v53, %v789_v59 }
 0x359   : > { %v798_v63 = vsel %vm795_vm14, %v797_v60, %v793_v62 }
 0x35a   : > { %v799_v2 = vmul.f32 %v798_v63, %v774_v0 }
 0x35c   : > { %v993_v3 = vclamps-f32 %v799_v2, 1.0 }
 0x35e   : > { %v802_v5 = vadd.f32 1.0, %v993_v3 }
 0x360   : > { %v803_v32 = vmul.f32 %v802_v5, %v760_v4 }
 0x362   : > { %v804_v6 = vpack.c.bf16 %v803_v32, %v803_v32 }
 0x364   : > { %881 = vmatmul.bf16.vlgmr.msra.gmra.mxu3 %v804_v6 }
 0x3e7   : > { %v882_v54 = vpop.f32.mrf.mxu3 }
 0x3e8   : > { %v883_v29 = vadd.f32 %v1089_v8, %v882_v54 }
 0x3ea   : > { %v886_v9 = vadd.f32 %v883_v29, %v1471_v7 }
 0x3ec   : > { %887 = vst.msk [vmem:[%s377_s15] sm:$0xff] %vm396_vm0, %v886_v9 }
 0x3ed   : > { %1133 = shalt.err (!%p1130_p3)
}
 0x3ee   : > { %1042 = dma.vmem_to_hbm [thread:$0]  (%p1270_p5), %s902_s16, 128, %s904_s0, %s889_s21  }
 0x3ef   : > { %v884_v7 = vpop.f32.mrf.mxu3 }
 0x3f0 PF: > { %p1048_p4 = scmp.ge.s32.totalorder %s1168_s20, 2  ;;  %s915_s22 = sand.u32 1, %s1156_s17  }
 0x3f1   : > { %s916_s14 = scalar_lea.sflag [#allocation3], %s915_s22 }
 0x3f2   : > { %p1045_p7 = pnand %p1048_p4, %p1274_p6 }
 0x3f4   : > { %p1046_p8 = pneg %p1045_p7 }
 0x3f6   : > { %1151 = dma.done.wait (%p1046_p8), %s916_s14, 128  }
 0x3f7   : > { %1153 = vsyncadd (%p1046_p8), %s916_s14, 4294967168  ;;  %p21_p9 = scmp.ge.s32.totalorder %s1257_s23, 4   ;;  %s1576_s17 = smov %s1160_s18 }
 0x3f8   : > { %s1577_s18 = smov %s1164_s19  ;;  %s1578_s19 = smov %s1268_s26 }
 0x3f9   : > { %s1579_s20 = smov %s1257_s23  ;;  %23 = sbr.rel (!%p21_p9) target bundleno = 6 (0x6), region = 99 }
 0x3fe   :  { %922 = vsyncpa [#allocation3], 1 }
 0x3ff   :  { %924 = vsyncpa [#allocation3 + $0x1], 1 }

</bundles_post_ra>
